<compile_context>
chip_gen: v6e
topology: v6e:2x2x1
jax: 0.10.0
libtpu: 0.0.40
codegen_flags: <defaults>
</compile_context>

<pallas_src>
import jax
import jax.numpy as jnp
from jax.experimental import pallas as pl
from jax.experimental.pallas import tpu as pltpu


def _round_up(n, m):
    return (n + m - 1) // m * m


def _focus_conv_kernel(z_ref, w_ref, b_ref, o_ref):
    # z_ref: (1, 4C, T) bf16  space-to-depth tile (channels on sublanes, lane-dense spatial)
    # w_ref: (c2, 4C)   bf16  BN-folded 1x1 conv weight
    # b_ref: (c2, 1)    f32   BN-folded bias
    # o_ref: (1, c2, T) f32
    y = jnp.dot(w_ref[...], z_ref[0], preferred_element_type=jnp.float32)  # (c2, T) f32
    y = y + b_ref[...]
    # SiLU: keep exp and the divide on the EUP (reciprocal), mul/add on the VPU.
    sig = pl.reciprocal(1.0 + jnp.exp(-y), approx=True)
    o_ref[0] = (y * sig).astype(o_ref.dtype)


def focus_forward(x, w, gamma, beta, mean, var, *, eps=1e-5, lane_tile=8192):
    """x: (B, C, H, W) f32.  w: (c2, 4C, 1, 1) 1x1 conv weight (no bias).
    gamma/beta/mean/var: BatchNorm2d params + running stats, shape (c2,)."""
    B, C, H, W = x.shape
    assert H % 2 == 0 and W % 2 == 0, "Focus requires even H and W"
    c2 = w.shape[0]
    C4 = 4 * C
    assert w.shape == (c2, C4, 1, 1)
    Ho, Wo = H // 2, W // 2
    S = Ho * Wo

    # ---- space-to-depth (slice + concat) as reshape/transpose; channel order
    # matches torch.cat([x[...,::2,::2], x[...,1::2,::2],
    #                    x[...,::2,1::2], x[...,1::2,1::2]], 1):
    # out channel = (2*col_parity + row_parity)*C + c  -> axis order (wpar, hpar, C)
    xr = x.reshape(B, C, Ho, 2, Wo, 2)
    z = xr.transpose(0, 5, 3, 1, 2, 4).reshape(B, C4, S)

    # ---- fold eval-mode BatchNorm into the 1x1 conv; matmul inputs in bf16 ----
    scale = gamma / jnp.sqrt(var + eps)                               # (c2,)
    w_f = (w.reshape(c2, C4) * scale[:, None]).astype(jnp.bfloat16)   # (c2, 4C)
    b_f = (beta - mean * scale).reshape(c2, 1).astype(jnp.float32)    # (c2, 1)
    z = z.astype(jnp.bfloat16)

    # ---- balanced, lane-dense spatial tiling (multiple of 128, minimal pad) ----
    LANE = 128
    max_tiles = pl.cdiv(S, LANE)
    n = min(max(1, pl.cdiv(S, lane_tile)), max_tiles)
    if (B * n) % 2 == 1 and n < max_tiles:
        n += 1  # even total grid steps -> both v7x TensorCores get work
    T = _round_up(pl.cdiv(S, n), LANE)
    n_tiles = pl.cdiv(S, T)
    S_pad = n_tiles * T
    if S_pad != S:
        z = jnp.pad(z, ((0, 0), (0, 0), (0, S_pad - S)))

    # ---- VMEM budget: double-buffered in/out blocks + weights/bias + in-kernel
    # f32 matmul-result / epilogue temporaries, plus headroom. No 32 MiB floor;
    # cap keeps us inside v7x's 64 MiB physical VMEM.
    C4_bf = _round_up(C4, 16)   # bf16 packs 16 rows per sublane tile
    c2_f32 = _round_up(c2, 8)
    needed = (2 * C4_bf * T * 2                                 # z blocks (bf16)
              + 2 * c2_f32 * T * 4                              # out blocks (f32)
              + 3 * c2_f32 * T * 4                              # f32 temporaries
              + 2 * _round_up(c2, 16) * _round_up(C4, 128) * 2  # weight (bf16)
              + 2 * c2_f32 * 128 * 4)                           # bias (f32)
    vmem_limit = int(min(needed + (8 << 20), 56 << 20))

    out = pl.pallas_call(
        _focus_conv_kernel,
        out_shape=jax.ShapeDtypeStruct((B, c2, S_pad), x.dtype),
        grid_spec=pltpu.PrefetchScalarGridSpec(
            num_scalar_prefetch=0,
            grid=(B, n_tiles),
            in_specs=[
                # NOTE: if profiling shows exposed DMA latency on the short
                # (few-sublane) z copies, add pipeline_mode=pl.Buffered(3) here.
                pl.BlockSpec((1, C4, T), lambda b, s: (b, 0, s)),
                pl.BlockSpec((c2, C4), lambda b, s: (0, 0)),
                pl.BlockSpec((c2, 1), lambda b, s: (0, 0)),
            ],
            out_specs=pl.BlockSpec((1, c2, T), lambda b, s: (b, 0, s)),
        ),
        compiler_params=pltpu.CompilerParams(
            dimension_semantics=("parallel", "parallel"),
            vmem_limit_bytes=vmem_limit,
            # Let XLA fuse the space-to-depth reshape/transpose/cast/pad chain
            # into the kernel's input instead of materializing z in HBM.
            allow_input_fusion=[True, False, False],
        ),
    )(z, w_f, b_f)

    out = out if S_pad == S else out[:, :, :S]
    return out.reshape(B, c2, Ho, Wo)


def _reference(x, w, gamma, beta, mean, var, eps=1e-5):
    """Plain-JAX reference: direct translation of the PyTorch Focus forward (eval BN)."""
    c2 = w.shape[0]
    z = jnp.concatenate(
        [x[..., ::2, ::2], x[..., 1::2, ::2], x[..., ::2, 1::2], x[..., 1::2, 1::2]],
        axis=1)                                                       # (B, 4C, Ho, Wo)
    y = jnp.einsum("oc,bchw->bohw", w.reshape(c2, -1), z)             # 1x1 conv, no bias
    y = (y - mean[None, :, None, None]) / jnp.sqrt(var[None, :, None, None] + eps)
    y = y * gamma[None, :, None, None] + beta[None, :, None, None]
    return y * jax.nn.sigmoid(y)                                      # SiLU


if __name__ == "__main__":
    def make_params(key, c1, c2):
        k1, k2, k3, k4, k5 = jax.random.split(key, 5)
        w = jax.random.normal(k1, (c2, 4 * c1, 1, 1), jnp.float32) * 0.1
        gamma = 1.0 + 0.1 * jax.random.normal(k2, (c2,), jnp.float32)
        beta = 0.1 * jax.random.normal(k3, (c2,), jnp.float32)
        mean = 0.1 * jax.random.normal(k4, (c2,), jnp.float32)
        var = jnp.abs(jax.random.normal(k5, (c2,), jnp.float32)) * 0.5 + 0.5
        return w, gamma, beta, mean, var

    key = jax.random.PRNGKey(0)
    # (B, c1, H, W, c2): first exercises the sub-128-lane padding path with an
    # even grid; second exercises a multi-tile spatial grid and c1=3 (YOLO stem).
    configs = [(2, 4, 16, 16, 32), (1, 3, 64, 64, 32)]
    for (B, C, H, W, c2) in configs:
        key, kx, kp = jax.random.split(key, 3)
        x = jax.random.normal(kx, (B, C, H, W), dtype=jnp.float32)
        w, gamma, beta, mean, var = make_params(kp, C, c2)

        out = jax.block_until_ready(focus_forward(x, w, gamma, beta, mean, var))
        ref = _reference(x, w, gamma, beta, mean, var)

        assert out.shape == (B, c2, H // 2, W // 2)
        # Tolerance loosened for the bf16 matmul inputs + approx reciprocal.
        assert jnp.allclose(out, ref, atol=3e-2, rtol=3e-2), \
            f"mismatch vs reference for config {(B, C, H, W, c2)}"

    print("KERNEL_OK")
</pallas_src>

<mosaic_0001>
module attributes {stable_mosaic.version = 11 : i64} {
  func.func @_focus_conv_kernel(%arg0: i32, %arg1: i32, %arg2: memref<1x16x128xbf16, #tpu.memory_space<vmem>>, %arg3: memref<32x16xbf16, #tpu.memory_space<vmem>>, %arg4: memref<32x1xf32, #tpu.memory_space<vmem>>, %arg5: memref<1x32x128xf32, #tpu.memory_space<vmem>>) attributes {dimension_semantics = [#tpu.dimension_semantics<parallel>, #tpu.dimension_semantics<parallel>], iteration_bounds = array<i64: 2, 1>, scalar_prefetch = 0 : i64, scratch_operands = 0 : i64, tpu.core_type = #tpu.core_type<tc>, window_params = [{transform_indices = @transform_0, window_bounds = array<i64: 1, 16, 128>}, {pipeline_mode = #tpu.pipeline_mode<synchronous>, transform_indices = @transform_1, window_bounds = array<i64: 32, 16>}, {pipeline_mode = #tpu.pipeline_mode<synchronous>, transform_indices = @transform_2, window_bounds = array<i64: 32, 1>}, {transform_indices = @transform_3, window_bounds = array<i64: 1, 32, 128>}]} {
    %c0 = arith.constant 0 : index
    %c0_0 = arith.constant 0 : index
    %0 = vector.load %arg3[%c0, %c0_0] : memref<32x16xbf16, #tpu.memory_space<vmem>>, vector<32x16xbf16>
    %c0_1 = arith.constant 0 : index
    %c0_2 = arith.constant 0 : index
    %c0_3 = arith.constant 0 : index
    %1 = vector.load %arg2[%c0_1, %c0_2, %c0_3] : memref<1x16x128xbf16, #tpu.memory_space<vmem>>, vector<1x16x128xbf16>
    %2 = vector.shape_cast %1 : vector<1x16x128xbf16> to vector<16x128xbf16>
    %cst = arith.constant dense<0.000000e+00> : vector<32x128xf32>
    %3 = tpu.matmul %0, %2, %cst {dimension_numbers = #tpu.dot_dimension_numbers<[1], [0], [0], [1], [0, 0, 1, 1], [], []>} : vector<32x16xbf16>, vector<16x128xbf16>, vector<32x128xf32> -> vector<32x128xf32>
    %c0_4 = arith.constant 0 : index
    %c0_5 = arith.constant 0 : index
    %4 = vector.load %arg4[%c0_4, %c0_5] : memref<32x1xf32, #tpu.memory_space<vmem>>, vector<32x1xf32>
    %5 = vector.broadcast %4 : vector<32x1xf32> to vector<32x128xf32>
    %6 = arith.addf %3, %5 : vector<32x128xf32>
    %cst_6 = arith.constant 0.000000e+00 : f32
    %7 = vector.broadcast %cst_6 : f32 to vector<32x128xf32>
    %8 = arith.subf %7, %6 : vector<32x128xf32>
    %9 = math.exp %8 : vector<32x128xf32>
    %cst_7 = arith.constant 1.000000e+00 : f32
    %10 = vector.broadcast %cst_7 : f32 to vector<32x128xf32>
    %11 = arith.addf %10, %9 : vector<32x128xf32>
    %12 = tpu.reciprocal %11 {approx = true} : vector<32x128xf32> -> vector<32x128xf32>
    %13 = arith.mulf %6, %12 : vector<32x128xf32>
    %c0_8 = arith.constant 0 : index
    %c0_9 = arith.constant 0 : index
    %c0_10 = arith.constant 0 : index
    %14 = vector.load %arg5[%c0_8, %c0_9, %c0_10] : memref<1x32x128xf32, #tpu.memory_space<vmem>>, vector<1x32x128xf32>
    %15 = vector.shape_cast %14 : vector<1x32x128xf32> to vector<32x128xf32>
    %16 = vector.shape_cast %13 : vector<32x128xf32> to vector<1x32x128xf32>
    tpu.vector_store %arg5[%c0_8, %c0_9, %c0_10], %16 {strides = array<i32>} : memref<1x32x128xf32, #tpu.memory_space<vmem>>, vector<1x32x128xf32>,
    return
  }
  func.func @transform_0(%arg0: i32, %arg1: i32) -> (i32, i32, i32) {
    %c0_i32 = arith.constant 0 : i32
    %c0_i32_0 = arith.constant 0 : i32
    return %arg0, %c0_i32, %arg1 : i32, i32, i32
  }
  func.func @transform_1(%arg0: i32, %arg1: i32) -> (i32, i32) {
    %c0_i32 = arith.constant 0 : i32
    %c0_i32_0 = arith.constant 0 : i32
    %c0_i32_1 = arith.constant 0 : i32
    return %c0_i32, %c0_i32_0 : i32, i32
  }
  func.func @transform_2(%arg0: i32, %arg1: i32) -> (i32, i32) {
    %c0_i32 = arith.constant 0 : i32
    %c0_i32_0 = arith.constant 0 : i32
    %c0_i32_1 = arith.constant 0 : i32
    return %c0_i32, %c0_i32_0 : i32, i32
  }
  func.func @transform_3(%arg0: i32, %arg1: i32) -> (i32, i32, i32) {
    %c0_i32 = arith.constant 0 : i32
    %c0_i32_0 = arith.constant 0 : i32
    return %arg0, %c0_i32, %arg1 : i32, i32, i32
  }
}

</mosaic_0001>

<bundles_post_ra>
// kernel: tpu_custom_call.1
= control target key start
LH: loop header
LB: loop body
LE: loop exit
PB: predicated region body
PF: predicated region fallthrough
CT: control target
= control target key end

     0   :  { %8 = vsyncpa [#allocation3], 0  ;;  %s762_s0 = inlined_call_operand.vmem [shape: bf16[2,16,128], index: 0, kind: input, shape index: {}]   ;;  %s763_s1 = inlined_call_operand.vmem [shape: bf16[32,16], index: 1, kind: input, shape index: {}]   ;;  %s764_s2 = inlined_call_operand.vmem [shape: f32[32,1], index: 2, kind: input, shape index: {}]   ;;  %s765_s3 = inlined_call_operand.hbm [shape: f32[2,32,128], index: 3, kind: output, shape index: {}]  }
   0x1   :  { %10 = vsyncpa [#allocation3 + $0x1], 0  ;;  %s628_s12 = smov 0   ;;  %s630_s13 = smov 0  }
   0x2   :  { %s632_s14 = smov 0   ;;  %s634_s15 = smov 0  }
   0x3   :  { %s636_s16 = smov 0   ;;  %s638_s17 = smov 0  }
   0x4 LB: > { %s418_s18 = sadd.s32 4294967295, %s602_s17   ;;  %s419_s19 = sadd.s32 4294967294, %s602_s17   ;;  %s602_s17 = sphi %s638_s17, %s16_s17   ;;  %s598_s16 = sphi %s636_s16, %s772_s16   ;;  %s594_s15 = sphi %s634_s15, %s771_s15   ;;  %s590_s14 = sphi %s632_s14, %s770_s14   ;;  %s586_s13 = sphi %s630_s13, %s769_s13   ;;  %s582_s12 = sphi %s628_s12, %s768_s12  }
   0x5   : > { %s28_s20 = sadd.s32 1, %s598_s16  ;;  %s107_s21 = sadd.s32 1, %s590_s14 }
   0x6   : > { %p30_p0 = scmp.ge.s32.totalorder %s28_s20, 2  ;;  %p117_p1 = scmp.ne.s32.totalorder %s590_s14, %s586_s13 }
   0x7   : > { %p118_p2 = scmp.eq.s32.totalorder %s418_s18, 1  ;;  %p123_p3 = scmp.ne.s32.totalorder %s586_s13, %s582_s12 }
   0x8   : > { %s774_s20 = smov (%p30_p0, %s28_s20), 0  ;;  %p124_p5 = scmp.eq.s32.totalorder %s419_s19, 1 }
   0x9   : > { %p668_p4 = por %p118_p2, %p117_p1  ;;  %s102_s23 = ssub.s32 %s598_s16, %s774_s20 }
   0xa   : > { %p422_p6 = scmp.ge.s32.totalorder %s602_s17, 1  ;;  %p105_p7 = scmp.eq.s32.totalorder %s102_s23, 0 }
   0xb   : > { %p675_p8 = por %p124_p5, %p123_p3  ;;  %p159_p9 = scmp.lt.s32.totalorder %s602_s17, 3 }
   0xc   : > { %s681_s25 = scalar_select %p105_p7, %s590_s14, %s107_s21  }
   0xd   : > { %p160_p10 = pnand %p422_p6, %p159_p9 }
   0xe   : > { %p186_p11 = scmp.lt.s32.totalorder (!%p160_p10), %s594_s15, 1  ;;  %s183_s26 = sand.u32 (!%p160_p10), 1, %s586_s13  }
   0xf   : > { %163 = sbr.rel (%p160_p10) target bundleno = 280 (0x118), region = 32  ;;  %s423_s27 = sshll.u32 (!%p160_p10), %s183_s26, 5 }
  0x10   : > { %s437_s30 = sshll.u32 (!%p160_p10), %s594_s15, 9  ;;  %s717_s7 = scalar_lea.sflag (!%p160_p10), [#allocation3], %s183_s26 }
  0x11   : > { %s605_s8 = smov (!%p160_p10), [#allocation2]  }
  0x14   : > { %v508_v0 = vld [vmem:[%s763_s1] sm:$0xff]   ;;  %vm241_vm0 = vcmask 130048   ;;  %s187_s28 = scalar_select %p186_p11, %s594_s15, 1  ;;  %v203_v1 = vld [vmem:[%s764_s2 + $0x10] sm:$0xff]  ;;  %v604_v3 = vmov 0   ;;  %v204_v4 = vld [vmem:[%s764_s2 + $0x18] sm:$0xff] }
  0x15   : > { %443 = vmatprep.mubr.msk.bf16.mxu0 %vm241_vm0, %v508_v0  ;;  %v201_v2 = vld [vmem:[%s764_s2] sm:$0xff]  ;;  %506 = vset.pattern.permute.xlu1 %v604_v3  ;;  %v202_v5 = vld [vmem:[%s764_s2 + $0x8] sm:$0xff] }
  0x16   : > { %505 = vset.pattern.permute.xlu0 %v604_v3  ;;  %s436_s6 = sshll.u32 %s187_s28, 3  ;;  %217 = vperm.xlu1 %506, %v203_v1   ;;  %v509_v7 = vld [vmem:[%s763_s1 + $0x8] sm:$0xff]   ;;  %s185_s28 = scalar_lea.vmem [#allocation2], %s423_s27 }
  0x17   : > { %207 = vperm.xlu0 %505, %v201_v2   ;;  %s193_s9 = scalar_lea.vmem %s762_s0, %s436_s6  ;;  %s340_s29 = sshll.u32 %s185_s28, 4  ;;  %s710_s29 = int_to_ptr.vmem [resolvable:$true] %s340_s29 }
  0x18   : > { %v507_v6 = vld [vmem:[%s193_s9] sm:$0xff]   ;;  %s715_s6 = scalar_lea.hbm %s765_s3, %s437_s30  ;;  %s526_s15 = scalar_lea.vmem %s710_s29, 512 }
  0x19   : > { %441 = vmatprep.subr.bf16.mxu0 %v507_v6  ;;  %p527_p12 = scmp.ne.s32.totalorder %s710_s29, %s526_s15  ;;  %s530_s9 = sshll.u32 %s605_s8, 4  ;;  %s531_s9 = int_to_ptr.vmem [resolvable:$false] %s530_s9 }
  0x1a   : > { %222 = vperm.xlu1 %506, %v204_v4   ;;  %442 = vmatpush3.bf16.msra.mxu0 %v507_v6  ;;  %s532_s10 = scalar_lea.vmem %s531_s9, 1024  ;;  %p533_p1 = scmp.lt.s32.totalorder %s710_s29, %s531_s9 }
  0x1b   : > { %212 = vperm.xlu0 %505, %v202_v5   ;;  %p528_p13 = pnand %p527_p12, %p668_p4  ;;  %p534_p2 = scmp.lt.s32.totalorder %s532_s10, %s526_s15 }
  0x1d   : > { %444 = vmatmul.mubr.msk.bf16.vlgmr.msra.gmra.mxu0 %vm241_vm0, %v509_v7  ;;  %p529_p0 = pneg %p528_p13  ;;  %p535_p3 = por %p534_p2, %p533_p1 }
  0x1f   : > { %p536_p5 = pnand %p535_p3, %p529_p0 }
  0x91   : > { %v218_v8 = vpop.permute.xlu1 %217 }
  0x92   : > { %v208_v9 = vpop.permute.xlu0 %207 }
  0x95   : > { %v223_v15 = vpop.permute.xlu1 %222 }
  0x96   : > { %v213_v20 = vpop.permute.xlu0 %212 }
  0xdd   : > { %v445_v10 = vpop.f32.mrf.mxu0 }
  0xde   : > { %v291_v11 = vadd.f32 %v445_v10, %v218_v8 }
  0xdf   : > { %v282_v12 = vpop.f32.mrf.mxu0 }
  0xe0   : > { %v299_v13 = vsub.f32 0.0, %v291_v11  ;;  %v283_v14 = vadd.f32 %v282_v12, %v208_v9 }
  0xe1   : > { %v446_v16 = vpop.f32.mrf.mxu0 }
  0xe2   : > { %v305_v17 = vmul.f32 1.442695, %v299_v13  ;;  %v297_v18 = vsub.f32 0.0, %v283_v14  ;;  %v294_v19 = vadd.f32 %v446_v16, %v223_v15 }
  0xe3   : > { %v285_v21 = vpop.f32.mrf.mxu0 }
  0xe4   : > { %510 = vpow2.f32 %v305_v17  ;;  %v301_v22 = vmul.f32 1.442695, %v297_v18  ;;  %v300_v23 = vsub.f32 0.0, %v294_v19  ;;  %v286_v24 = vadd.f32 %v285_v21, %v213_v20 }
  0xe6   : > { %512 = vpow2.f32 %v301_v22  ;;  %v307_v25 = vmul.f32 1.442695, %v300_v23  ;;  %v298_v26 = vsub.f32 0.0, %v286_v24 }
  0xe8   : > { %514 = vpow2.f32 %v307_v25  ;;  %v303_v27 = vmul.f32 1.442695, %v298_v26 }
  0xea   : > { %516 = vpow2.f32 %v303_v27 }
  0xf1   : > { %v511_v28 = vpop.eup %510 }
  0xf2   : > { %v311_v29 = vadd.f32 1.0, %v511_v28 }
  0xf3   : > { %v513_v30 = vpop.eup %512 }
  0xf4   : > { %518 = vrcp.f32 %v311_v29  ;;  %v309_v31 = vadd.f32 1.0, %v513_v30 }
  0xf5   : > { %v515_v32 = vpop.eup %514 }
  0xf6   : > { %520 = vrcp.f32 %v309_v31  ;;  %v312_v33 = vadd.f32 1.0, %v515_v32 }
  0xf7   : > { %v517_v34 = vpop.eup %516 }
  0xf8   : > { %522 = vrcp.f32 %v312_v33  ;;  %v310_v35 = vadd.f32 1.0, %v517_v34 }
  0xfa   : > { %524 = vrcp.f32 %v310_v35 }
 0x101   : > { %v519_v36 = vpop.eup %518 }
 0x102   : > { %v319_v37 = vmul.f32 %v519_v36, %v291_v11 }
 0x103   : > { %v521_v38 = vpop.eup %520 }
 0x104   : > { %323 = vst [vmem:[%s185_s28 + $0x10] sm:$0xff] %v319_v37  ;;  %v317_v39 = vmul.f32 %v521_v38, %v283_v14 }
 0x105   : > { %v523_v40 = vpop.eup %522 }
 0x106   : > { %321 = vst [vmem:[%s185_s28] sm:$0xff] %v317_v39  ;;  %v320_v41 = vmul.f32 %v523_v40, %v294_v19 }
 0x107   : > { %v525_v42 = vpop.eup %524 }
 0x108   : > { %324 = vst [vmem:[%s185_s28 + $0x18] sm:$0xff] %v320_v41  ;;  %v318_v43 = vmul.f32 %v525_v42, %v286_v24 }
 0x10a   : > { %322 = vst [vmem:[%s185_s28 + $0x8] sm:$0xff] %v318_v43 }
 0x10b   : > { %539 = shalt.err (!%p536_p5)
}
 0x10c   : > { %s540_s11 = scalar_lea.hbm %s715_s6, 512  ;;  %s544_s21 = scalar_lea.hbm %s765_s3, 1024 }
 0x10d   : > { %p541_p6 = scmp.ne.s32.totalorder %s715_s6, %s540_s11  ;;  %p545_p10 = scmp.lt.s32.totalorder %s715_s6, %s765_s3 }
 0x10e   : > { %p546_p11 = scmp.lt.s32.totalorder %s544_s21, %s540_s11 }
 0x10f   : > { %p542_p7 = pnand %p541_p6, %p668_p4 }
 0x110   : > { %p547_p12 = por %p546_p11, %p545_p10 }
 0x111   : > { %p543_p9 = pneg %p542_p7 }
 0x113   : > { %p548_p13 = pnand %p547_p12, %p543_p9 }
 0x115   : > { %551 = shalt.err (!%p548_p13)
}
 0x116   : > { %s606_s27 = smov 128   ;;  %s607_s28 = smov 8  }
 0x117   : > { %447 = dma.vmem_to_hbm [thread:$0]  (%p668_p4), %s710_s29, 512, %s715_s6, %s717_s7, %s606_s27, %s606_s27, %s607_s28  }
 0x118 PF: > { %p453_p0 = scmp.ge.s32.totalorder %s602_s17, 2  ;;  %s355_s30 = sand.u32 1, %s582_s12  }
 0x119   : > { %s356_s4 = scalar_lea.sflag [#allocation3], %s355_s30 }
 0x11a   : > { %p450_p1 = pnand %p453_p0, %p675_p8 }
 0x11c   : > { %p451_p2 = pneg %p450_p1 }
 0x11e   : > { %577 = dma.done.wait (%p451_p2), %s356_s4, 512  }
 0x11f   : > { %579 = vsyncadd (%p451_p2), %s356_s4, 4294966784  ;;  %s16_s17 = sadd.s32 1, %s602_s17   ;;  %s768_s12 = smov %s586_s13 }
 0x120   : > { %p13_p3 = scmp.ge.s32.totalorder %s16_s17, 4   ;;  %s769_s13 = smov %s590_s14 }
 0x121   : > { %s770_s14 = smov %s681_s25  ;;  %s771_s15 = smov %s598_s16 }
 0x122   : > { %s772_s16 = smov %s774_s20  ;;  %15 = sbr.rel (!%p13_p3) target bundleno = 4 (0x4), region = 67 }
 0x127   :  { %361 = vsyncpa [#allocation3], 1 }
 0x128   :  { %363 = vsyncpa [#allocation3 + $0x1], 1 }

</bundles_post_ra>
